<compile_context>
chip_gen: v7x
topology: tpu7x:2x2x1
jax: 0.10.0
libtpu: 0.0.40
codegen_flags: <defaults>
</compile_context>

<pallas_src>
import functools

import jax
import jax.numpy as jnp
from jax.experimental import pallas as pl
from jax.experimental.pallas import tpu as pltpu

_LANE = 128


# --------------------------------------------------------------------------- #
# Kernels
# --------------------------------------------------------------------------- #
def _fused_kernel(x_ref, w_ref, b_ref, o_ref):
    """Whole vocab in one lane-dense block: log_softmax(x @ W + b, axis=-1)."""
    # Native-dtype operands straight into the MXU; f32 accumulation.
    logits = jnp.dot(x_ref[...], w_ref[...], preferred_element_type=jnp.float32)
    logits = logits + b_ref[...].astype(jnp.float32)
    m = jnp.max(logits, axis=-1, keepdims=True)
    shifted = logits - m
    lse = jnp.log(jnp.sum(jnp.exp(shifted), axis=-1, keepdims=True))
    o_ref[...] = (shifted - lse).astype(o_ref.dtype)


def _lse_kernel(x_ref, w_ref, b_ref, lse_ref, m_sc, l_sc, *, v_total, tv):
    """Vocab sweep 1: online logsumexp over vocab tiles (grid axis 1)."""
    j = pl.program_id(1)

    @pl.when(j == 0)
    def _():
        m_sc[...] = jnp.full(m_sc.shape, -jnp.inf, dtype=m_sc.dtype)
        l_sc[...] = jnp.zeros(l_sc.shape, dtype=l_sc.dtype)

    logits = jnp.dot(x_ref[...], w_ref[...], preferred_element_type=jnp.float32)
    logits = logits + b_ref[...].astype(jnp.float32)
    if v_total % tv != 0:
        # Ragged last vocab tile: keep OOB lanes out of the reduction.
        col = j * tv + jax.lax.broadcasted_iota(jnp.int32, logits.shape, 1)
        logits = jnp.where(col < v_total, logits, -jnp.inf)

    m_prev = m_sc[...]
    m_new = jnp.maximum(m_prev, jnp.max(logits, axis=-1, keepdims=True))
    l_sc[...] = (l_sc[...] * jnp.exp(m_prev - m_new)
                 + jnp.sum(jnp.exp(logits - m_new), axis=-1, keepdims=True))
    m_sc[...] = m_new

    @pl.when(j == pl.num_programs(1) - 1)
    def _():
        lse_ref[...] = m_sc[...] + jnp.log(l_sc[...])


def _emit_kernel(x_ref, w_ref, b_ref, lse_ref, o_ref):
    """Vocab sweep 2: recompute the logits tile and store logits - lse."""
    logits = jnp.dot(x_ref[...], w_ref[...], preferred_element_type=jnp.float32)
    logits = logits + b_ref[...].astype(jnp.float32)
    o_ref[...] = (logits - lse_ref[...]).astype(o_ref.dtype)


# --------------------------------------------------------------------------- #
# Tile sizing
# --------------------------------------------------------------------------- #
def _round_up(v, m):
    return ((v + m - 1) // m) * m


def _sublane(dtype):
    return {4: 8, 2: 16, 1: 32}.get(jnp.dtype(dtype).itemsize, 8)


def _vmem_budget_bytes():
    """Per-generation working-set budget / scoped limit, derived from HW."""
    try:
        cap = int(pltpu.get_tpu_info().vmem_capacity_bytes)
    except Exception:
        cap = 64 * 1024 * 1024      # conservative default (v7x per-TensorCore)
    # ~80 MiB budget / ~100 MiB limit on 128 MiB parts (v5e / v6e),
    # ~40 MiB budget / ~50  MiB limit on 64 MiB parts (v7x).
    return (cap * 5) // 8, (cap * 25) // 32


def _fused_row_tile(R, D, V, x_it, w_it, o_it, budget, row_target, sublane):
    """Row tile for the single-vocab-block kernel, or None if infeasible."""
    resident = (D * V + V) * w_it                 # weight + bias, single-buffered
    per_row = (2 * D * x_it                       # x tile (double-buffered)
               + 2 * V * o_it                     # out tile (double-buffered)
               + 3 * V * 4)                       # f32 logits/shift/exp slabs
    avail = budget - resident
    if avail <= 0:
        return None
    tr_cap = avail // per_row
    # Degenerate tiny-row-tile guard: don't silently run DMA-bound 8-row
    # tiles; route to the vocab-tiled path instead.
    if tr_cap < min(64, _round_up(R, sublane)):
        return None
    tr = min(tr_cap, row_target, _round_up(R, sublane))
    if tr >= R:
        return R
    return max((tr // sublane) * sublane, sublane)


def _tiled_step_bytes(tr, tv, D, x_it, w_it, o_it):
    return (2 * tr * D * x_it                     # x tile (double-buffered)
            + 2 * (D * tv + tv) * w_it            # weight + bias vocab tile
            + 3 * tr * tv * 4                     # f32 logits/exp slabs
            + 2 * tr * tv * o_it                  # emit-sweep output tile
            + 6 * tr * 4)                         # m/l scratch + lse tile


def _vocab_tiled_tiles(R, D, V, x_it, w_it, o_it, budget, row_target,
                       vocab_target, sublane):
    """(row_tile, vocab_tile) for the online-logsumexp path."""
    tv = _round_up(min(max(vocab_target, _LANE), _round_up(V, _LANE)), _LANE)
    while tv > _LANE and _tiled_step_bytes(sublane, tv, D, x_it, w_it, o_it) > budget:
        tv -= _LANE
    if _tiled_step_bytes(sublane, tv, D, x_it, w_it, o_it) > budget:
        # TODO(synk): d_model (K) tiling for extremely large d_model is not
        # implemented; a (D, 128) weight tile must fit VMEM.
        raise ValueError(
            f"projection_log_softmax: minimal ({sublane}, {tv}) tile exceeds "
            f"the VMEM budget ({budget} bytes); d_model={D} is too large.")
    fixed = 2 * (D * tv + tv) * w_it
    per_row = 2 * D * x_it + 3 * tv * 4 + 2 * tv * o_it + 24
    tr = min((budget - fixed) // per_row, row_target, _round_up(R, sublane))
    if tr >= R:
        return R, tv
    return max((tr // sublane) * sublane, sublane), tv


# --------------------------------------------------------------------------- #
# pallas_call wrappers
# --------------------------------------------------------------------------- #
def _run_fused(x2, w, b2, out_dtype, tr, vmem_limit):
    R, D = x2.shape
    V = w.shape[1]

    def build(single_buffer_consts):
        # Weight/bias index_maps are constant -> request single buffering so
        # the resident (D, V) slab is only held once in VMEM.
        const_kw = dict(pipeline_mode=pl.Buffered(1)) if single_buffer_consts else {}
        return pl.pallas_call(
            _fused_kernel,
            out_shape=jax.ShapeDtypeStruct((R, V), out_dtype),
            grid_spec=pltpu.PrefetchScalarGridSpec(
                num_scalar_prefetch=0,
                grid=(pl.cdiv(R, tr),),
                in_specs=[
                    pl.BlockSpec((tr, D), lambda i: (i, 0)),
                    pl.BlockSpec((D, V), lambda i: (0, 0), **const_kw),
                    pl.BlockSpec((1, V), lambda i: (0, 0), **const_kw),
                ],
                out_specs=pl.BlockSpec((tr, V), lambda i: (i, 0)),
            ),
            compiler_params=pltpu.CompilerParams(
                dimension_semantics=("parallel",),
                vmem_limit_bytes=vmem_limit,
            ),
        )

    try:
        return build(True)(x2, w, b2)
    except Exception:
        # Fallback for jax / Mosaic builds without single-buffer pipeline_mode.
        return build(False)(x2, w, b2)


def _run_vocab_tiled(x2, w, b2, out_dtype, tr, tv, vmem_limit):
    R, D = x2.shape
    V = w.shape[1]
    grid = (pl.cdiv(R, tr), pl.cdiv(V, tv))

    x_spec = pl.BlockSpec((tr, D), lambda i, j: (i, 0))
    w_spec = pl.BlockSpec((D, tv), lambda i, j: (0, j))
    b_spec = pl.BlockSpec((1, tv), lambda i, j: (0, j))
    lse_spec = pl.BlockSpec((tr, 1), lambda i, j: (i, 0))
    o_spec = pl.BlockSpec((tr, tv), lambda i, j: (i, j))
    # Rows stay "parallel" (v7x shards them across its 2 TensorCores); the
    # vocab reduction axis is innermost and "arbitrary" (core-local).
    cparams = pltpu.CompilerParams(
        dimension_semantics=("parallel", "arbitrary"),
        vmem_limit_bytes=vmem_limit,
    )

    # Sweep 1: per-row logsumexp via an online max/sum held in VMEM scratch.
    lse = pl.pallas_call(
        functools.partial(_lse_kernel, v_total=V, tv=tv),
        out_shape=jax.ShapeDtypeStruct((R, 1), jnp.float32),
        grid_spec=pltpu.PrefetchScalarGridSpec(
            num_scalar_prefetch=0,
            grid=grid,
            in_specs=[x_spec, w_spec, b_spec],
            out_specs=lse_spec,
            scratch_shapes=[pltpu.VMEM((tr, 1), jnp.float32),
                            pltpu.VMEM((tr, 1), jnp.float32)],
        ),
        compiler_params=cparams,
    )(x2, w, b2)

    # Sweep 2: recompute each logits tile and emit `logits - lse`.
    # TODO(synk): a single-sweep variant that stages logits through HBM would
    # trade the second matmul for extra HBM traffic; not implemented.
    return pl.pallas_call(
        _emit_kernel,
        out_shape=jax.ShapeDtypeStruct((R, V), out_dtype),
        grid_spec=pltpu.PrefetchScalarGridSpec(
            num_scalar_prefetch=0,
            grid=grid,
            in_specs=[x_spec, w_spec, b_spec, lse_spec],
            out_specs=o_spec,
        ),
        compiler_params=cparams,
    )(x2, w, b2, lse)


def projection_log_softmax(x, w, b, *, out_dtype=None, row_tile_target=512,
                           vocab_tile_target=2048, force_vocab_tiled=False):
    """log_softmax(x @ w + b, axis=-1).  x: (B, S, D); w: (D, V); b: (V,)."""
    B, S, D = x.shape
    Dw, V = w.shape
    assert D == Dw, "weight must be (d_model, vocab_size)"
    out_dtype = x.dtype if out_dtype is None else jnp.dtype(out_dtype)

    R = B * S
    x2 = x.reshape(R, D)            # contiguous reshape: no HBM round trip
    b2 = b.reshape(1, V)

    x_it = jnp.dtype(x.dtype).itemsize
    w_it = jnp.dtype(w.dtype).itemsize
    o_it = jnp.dtype(out_dtype).itemsize
    sublane = _sublane(x.dtype)
    budget, limit = _vmem_budget_bytes()
    row_target = max((row_tile_target // sublane) * sublane, sublane)

    tr_fused = None
    if not force_vocab_tiled:
        tr_fused = _fused_row_tile(R, D, V, x_it, w_it, o_it, budget,
                                   row_target, sublane)
    if tr_fused is not None:
        out2 = _run_fused(x2, w, b2, out_dtype, tr_fused, limit)
    else:
        tr, tv = _vocab_tiled_tiles(R, D, V, x_it, w_it, o_it, budget,
                                    row_target, vocab_tile_target, sublane)
        out2 = _run_vocab_tiled(x2, w, b2, out_dtype, tr, tv, limit)
    return out2.reshape(B, S, V)


# --------------------------------------------------------------------------- #
# Demo / self-test
# --------------------------------------------------------------------------- #
if __name__ == "__main__":
    key = jax.random.PRNGKey(0)

    def make_inputs(k, B, S, D, V, dtype):
        kx, kw, kb = jax.random.split(k, 3)
        bound = 1.0 / (D ** 0.5)        # torch nn.Linear default init
        x = jax.random.normal(kx, (B, S, D), dtype=jnp.float32)
        w = jax.random.uniform(kw, (D, V), minval=-bound, maxval=bound,
                               dtype=jnp.float32)
        b = jax.random.uniform(kb, (V,), minval=-bound, maxval=bound,
                               dtype=jnp.float32)
        # Quantize to bf16-representable values so the MXU path and the XLA
        # reference see identical operands regardless of default matmul
        # precision -> lets us keep a tight (1e-5 scale) tolerance.
        q = lambda a: a.astype(jnp.bfloat16).astype(jnp.float32)
        return q(x).astype(dtype), q(w).astype(dtype), q(b).astype(dtype)

    def reference(x, w, b):
        logits = jnp.einsum("bsd,dv->bsv", x.astype(jnp.float32),
                            w.astype(jnp.float32)) + b.astype(jnp.float32)
        return jax.nn.log_softmax(logits, axis=-1)

    k1, k2, k3, k4 = jax.random.split(key, 4)
    ATOL = 2e-5

    # 1) Small-vocab fused path (single lane-dense vocab block).
    x, w, b = make_inputs(k1, 2, 8, 32, 128, jnp.float32)
    out = jax.block_until_ready(projection_log_softmax(x, w, b))
    ref = reference(x, w, b)
    assert out.shape == (2, 8, 128)
    assert jnp.allclose(out, ref, atol=ATOL, rtol=ATOL), float(jnp.max(jnp.abs(out - ref)))
    assert jnp.allclose(jnp.sum(jnp.exp(out), axis=-1), 1.0, atol=1e-4)

    # 2) Ragged row tiles (R=20 rows over 8-row tiles -> masked tail block).
    x, w, b = make_inputs(k2, 4, 5, 32, 128, jnp.float32)
    out = jax.block_until_ready(projection_log_softmax(x, w, b, row_tile_target=8))
    ref = reference(x, w, b)
    assert jnp.allclose(out, ref, atol=ATOL, rtol=ATOL), float(jnp.max(jnp.abs(out - ref)))

    # 3) Vocab-tiled online-logsumexp path with a ragged last vocab tile
    #    (V=320 over 128-wide tiles), exercising the large-vocab code path.
    x, w, b = make_inputs(k3, 2, 8, 64, 320, jnp.float32)
    out = jax.block_until_ready(projection_log_softmax(
        x, w, b, force_vocab_tiled=True, vocab_tile_target=128, row_tile_target=8))
    ref = reference(x, w, b)
    assert out.shape == (2, 8, 320)
    assert jnp.allclose(out, ref, atol=ATOL, rtol=ATOL), float(jnp.max(jnp.abs(out - ref)))
    assert jnp.allclose(jnp.sum(jnp.exp(out), axis=-1), 1.0, atol=1e-4)

    # 4) bf16 activations/weights fed straight to the MXU (f32 accumulation),
    #    f32 log-prob output.
    x, w, b = make_inputs(k4, 2, 8, 32, 128, jnp.bfloat16)
    out = jax.block_until_ready(projection_log_softmax(x, w, b, out_dtype=jnp.float32))
    ref = reference(x, w, b)
    assert jnp.allclose(out, ref, atol=ATOL, rtol=ATOL), float(jnp.max(jnp.abs(out - ref)))

    print("KERNEL_OK")
</pallas_src>

<mosaic_0001>
module attributes {stable_mosaic.version = 11 : i64} {
  func.func @_fused_kernel(%arg0: i32, %arg1: memref<16x32xf32, #tpu.memory_space<vmem>>, %arg2: memref<32x128xf32, #tpu.memory_space<vmem>>, %arg3: memref<1x128xf32, #tpu.memory_space<vmem>>, %arg4: memref<16x128xf32, #tpu.memory_space<vmem>>) attributes {dimension_semantics = [#tpu.dimension_semantics<parallel>], iteration_bounds = array<i64: 1>, scalar_prefetch = 0 : i64, scratch_operands = 0 : i64, tpu.core_type = #tpu.core_type<tc>, window_params = [{transform_indices = @transform_0, window_bounds = array<i64: 16, 32>}, {pipeline_mode = #tpu.pipeline_mode<synchronous>, transform_indices = @transform_1, window_bounds = array<i64: 32, 128>}, {pipeline_mode = #tpu.pipeline_mode<synchronous>, transform_indices = @transform_2, window_bounds = array<i64: 1, 128>}, {transform_indices = @transform_3, window_bounds = array<i64: 16, 128>}]} {
    %c0 = arith.constant 0 : index
    %c0_0 = arith.constant 0 : index
    %0 = vector.load %arg1[%c0, %c0_0] : memref<16x32xf32, #tpu.memory_space<vmem>>, vector<16x32xf32>
    %c0_1 = arith.constant 0 : index
    %c0_2 = arith.constant 0 : index
    %1 = vector.load %arg2[%c0_1, %c0_2] : memref<32x128xf32, #tpu.memory_space<vmem>>, vector<32x128xf32>
    %cst = arith.constant dense<0.000000e+00> : vector<16x128xf32>
    %2 = tpu.matmul %0, %1, %cst {dimension_numbers = #tpu.dot_dimension_numbers<[1], [0], [0], [1], [0, 0, 1, 1], [], []>} : vector<16x32xf32>, vector<32x128xf32>, vector<16x128xf32> -> vector<16x128xf32>
    %c0_3 = arith.constant 0 : index
    %c0_4 = arith.constant 0 : index
    %3 = vector.load %arg3[%c0_3, %c0_4] : memref<1x128xf32, #tpu.memory_space<vmem>>, vector<1x128xf32>
    %4 = vector.broadcast %3 : vector<1x128xf32> to vector<16x128xf32>
    %5 = arith.addf %2, %4 : vector<16x128xf32>
    %cst_5 = arith.constant dense<0xFF800000> : vector<16xf32>
    %6 = vector.multi_reduction <maximumf>, %5, %cst_5 [1] : vector<16x128xf32> to vector<16xf32>
    %7 = vector.shape_cast %6 : vector<16xf32> to vector<16x1xf32>
    %8 = vector.broadcast %7 : vector<16x1xf32> to vector<16x128xf32>
    %9 = arith.subf %5, %8 : vector<16x128xf32>
    %10 = math.exp %9 : vector<16x128xf32>
    %cst_6 = arith.constant dense<0.000000e+00> : vector<16xf32>
    %11 = vector.multi_reduction <add>, %10, %cst_6 [1] : vector<16x128xf32> to vector<16xf32>
    %12 = vector.shape_cast %11 : vector<16xf32> to vector<16x1xf32>
    %13 = math.log %12 : vector<16x1xf32>
    %14 = vector.broadcast %13 : vector<16x1xf32> to vector<16x128xf32>
    %15 = arith.subf %9, %14 : vector<16x128xf32>
    %c0_7 = arith.constant 0 : index
    %c0_8 = arith.constant 0 : index
    %16 = vector.load %arg4[%c0_7, %c0_8] : memref<16x128xf32, #tpu.memory_space<vmem>>, vector<16x128xf32>
    tpu.vector_store %arg4[%c0_7, %c0_8], %15 {strides = array<i32>} : memref<16x128xf32, #tpu.memory_space<vmem>>, vector<16x128xf32>,
    return
  }
  func.func @transform_0(%arg0: i32) -> (i32, i32) {
    %c0_i32 = arith.constant 0 : i32
    %c0_i32_0 = arith.constant 0 : i32
    return %arg0, %c0_i32 : i32, i32
  }
  func.func @transform_1(%arg0: i32) -> (i32, i32) {
    %c0_i32 = arith.constant 0 : i32
    %c0_i32_0 = arith.constant 0 : i32
    %c0_i32_1 = arith.constant 0 : i32
    return %c0_i32, %c0_i32_0 : i32, i32
  }
  func.func @transform_2(%arg0: i32) -> (i32, i32) {
    %c0_i32 = arith.constant 0 : i32
    %c0_i32_0 = arith.constant 0 : i32
    %c0_i32_1 = arith.constant 0 : i32
    return %c0_i32, %c0_i32_0 : i32, i32
  }
  func.func @transform_3(%arg0: i32) -> (i32, i32) {
    %c0_i32 = arith.constant 0 : i32
    %c0_i32_0 = arith.constant 0 : i32
    return %arg0, %c0_i32 : i32, i32
  }
}

module attributes {stable_mosaic.version = 11 : i64} {
  func.func @_fused_kernel(%arg0: i32, %arg1: memref<16x32xf32, #tpu.memory_space<vmem>>, %arg2: memref<32x128xf32, #tpu.memory_space<vmem>>, %arg3: memref<1x128xf32, #tpu.memory_space<vmem>>, %arg4: memref<16x128xf32, #tpu.memory_space<vmem>>) attributes {dimension_semantics = [#tpu.dimension_semantics<parallel>], iteration_bounds = array<i64: 1>, scalar_prefetch = 0 : i64, scratch_operands = 0 : i64, tpu.core_type = #tpu.core_type<tc>, window_params = [{transform_indices = @transform_0, window_bounds = array<i64: 16, 32>}, {pipeline_mode = #tpu.pipeline_mode<synchronous>, transform_indices = @transform_1, window_bounds = array<i64: 32, 128>}, {pipeline_mode = #tpu.pipeline_mode<synchronous>, transform_indices = @transform_2, window_bounds = array<i64: 1, 128>}, {transform_indices = @transform_3, window_bounds = array<i64: 16, 128>}]} {
    %c0 = arith.constant 0 : index
    %c0_0 = arith.constant 0 : index
    %0 = vector.load %arg1[%c0, %c0_0] : memref<16x32xf32, #tpu.memory_space<vmem>>, vector<16x32xf32>
    %c0_1 = arith.constant 0 : index
    %c0_2 = arith.constant 0 : index
    %1 = vector.load %arg2[%c0_1, %c0_2] : memref<32x128xf32, #tpu.memory_space<vmem>>, vector<32x128xf32>
    %cst = arith.constant dense<0.000000e+00> : vector<16x128xf32>
    %2 = tpu.matmul %0, %1, %cst {dimension_numbers = #tpu.dot_dimension_numbers<[1], [0], [0], [1], [0, 0, 1, 1], [], []>} : vector<16x32xf32>, vector<32x128xf32>, vector<16x128xf32> -> vector<16x128xf32>
    %c0_3 = arith.constant 0 : index
    %c0_4 = arith.constant 0 : index
    %3 = vector.load %arg3[%c0_3, %c0_4] : memref<1x128xf32, #tpu.memory_space<vmem>>, vector<1x128xf32>
    %4 = vector.broadcast %3 : vector<1x128xf32> to vector<16x128xf32>
    %5 = arith.addf %2, %4 : vector<16x128xf32>
    %cst_5 = arith.constant dense<0xFF800000> : vector<16xf32>
    %6 = vector.multi_reduction <maximumf>, %5, %cst_5 [1] : vector<16x128xf32> to vector<16xf32>
    %7 = vector.shape_cast %6 : vector<16xf32> to vector<16x1xf32>
    %8 = vector.broadcast %7 : vector<16x1xf32> to vector<16x128xf32>
    %9 = arith.subf %5, %8 : vector<16x128xf32>
    %10 = math.exp %9 : vector<16x128xf32>
    %cst_6 = arith.constant dense<0.000000e+00> : vector<16xf32>
    %11 = vector.multi_reduction <add>, %10, %cst_6 [1] : vector<16x128xf32> to vector<16xf32>
    %12 = vector.shape_cast %11 : vector<16xf32> to vector<16x1xf32>
    %13 = math.log %12 : vector<16x1xf32>
    %14 = vector.broadcast %13 : vector<16x1xf32> to vector<16x128xf32>
    %15 = arith.subf %9, %14 : vector<16x128xf32>
    %c0_7 = arith.constant 0 : index
    %c0_8 = arith.constant 0 : index
    %16 = vector.load %arg4[%c0_7, %c0_8] : memref<16x128xf32, #tpu.memory_space<vmem>>, vector<16x128xf32>
    tpu.vector_store %arg4[%c0_7, %c0_8], %15 {strides = array<i32>} : memref<16x128xf32, #tpu.memory_space<vmem>>, vector<16x128xf32>,
    return
  }
  func.func @transform_0(%arg0: i32) -> (i32, i32) {
    %c0_i32 = arith.constant 0 : i32
    %c0_i32_0 = arith.constant 0 : i32
    return %arg0, %c0_i32 : i32, i32
  }
  func.func @transform_1(%arg0: i32) -> (i32, i32) {
    %c0_i32 = arith.constant 0 : i32
    %c0_i32_0 = arith.constant 0 : i32
    %c0_i32_1 = arith.constant 0 : i32
    return %c0_i32, %c0_i32_0 : i32, i32
  }
  func.func @transform_2(%arg0: i32) -> (i32, i32) {
    %c0_i32 = arith.constant 0 : i32
    %c0_i32_0 = arith.constant 0 : i32
    %c0_i32_1 = arith.constant 0 : i32
    return %c0_i32, %c0_i32_0 : i32, i32
  }
  func.func @transform_3(%arg0: i32) -> (i32, i32) {
    %c0_i32 = arith.constant 0 : i32
    %c0_i32_0 = arith.constant 0 : i32
    return %arg0, %c0_i32 : i32, i32
  }
}

</mosaic_0001>

<bundles_post_ra>
// kernel: tpu_custom_call.1
= control target key start
LH: loop header
LB: loop body
LE: loop exit
PB: predicated region body
PF: predicated region fallthrough
CT: control target
= control target key end

     0   :  { %8 = vsyncpa [#allocation3], 0  ;;  %s364_s0 = inlined_call_operand.hbm [shape: f32[16,32], index: 0, kind: input, shape index: {}]   ;;  %s365_s1 = inlined_call_operand.hbm [shape: f32[32,128], index: 1, kind: input, shape index: {}]   ;;  %s366_s2 = inlined_call_operand.vmem [shape: f32[1,128], index: 2, kind: input, shape index: {}]   ;;  %s367_s3 = inlined_call_operand.hbm [shape: f32[16,128], index: 3, kind: output, shape index: {}]  }
   0x1   :  { %9 = vsyncpa [#allocation6], 0 }
   0x2   :  { %10 = vsyncpa [#allocation4], 0  ;;  %s291_s12 = smov [#allocation2]   ;;  %s219_s16 = scalar_lea.hbm %s364_s0, 256 }
   0x3   :  { %s16_s13 = sshll.u32 %s291_s12, 4  ;;  %p220_p0 = scmp.ne.s32.totalorder %s364_s0, %s219_s16  ;;  %s17_s13 = int_to_ptr.vmem [resolvable:$true] %s16_s13 }
   0x4   :  { %p223_p1 = scmp.lt.u32.totalorder %s219_s16, %s364_s0 }
   0x6   :  { %p225_p2 = pnand %p223_p1, %p220_p0 }
   0x8   :  { %228 = shalt.err (!%p225_p2)
}
   0x9   :  { %s229_s21 = scalar_lea.vmem %s17_s13, 256  ;;  %p234_p4 = scmp.lt.s32.totalorder %s17_s13, %s17_s13 }
   0xa   :  { %p230_p3 = scmp.ne.s32.totalorder %s17_s13, %s229_s21  ;;  %p235_p5 = scmp.lt.s32.totalorder %s229_s21, %s229_s21 }
   0xc   :  { %p236_p6 = por %p235_p5, %p234_p4 }
   0xe   :  { %p237_p7 = pnand %p236_p6, %p230_p3 }
  0x10   :  { %240 = shalt.err (!%p237_p7)
}
  0x11   :  { %s292_s22 = smov 128   ;;  %s293_s23 = smov 8  }
  0x12   :  { %22 = dma.hbm_to_vmem [thread:$0]  %s364_s0, 256, %s17_s13, [#allocation3], %s292_s22, %s292_s22, %s293_s23  }
  0x13   :  { %s294_s26 = smov [#allocation5]   ;;  %s241_s30 = scalar_lea.hbm %s365_s1, 512 }
  0x14   :  { %s28_s27 = sshll.u32 %s294_s26, 4  ;;  %p242_p8 = scmp.ne.s32.totalorder %s365_s1, %s241_s30  ;;  %s29_s27 = int_to_ptr.vmem [resolvable:$true] %s28_s27 }
  0x15   :  { %p245_p9 = scmp.lt.u32.totalorder %s241_s30, %s365_s1 }
  0x17   :  { %p247_p10 = pnand %p245_p9, %p242_p8 }
  0x19   :  { %250 = shalt.err (!%p247_p10)
}
  0x1a   :  { %s251_s8 = scalar_lea.vmem %s29_s27, 512  ;;  %p256_p12 = scmp.lt.s32.totalorder %s29_s27, %s29_s27 }
  0x1b   :  { %p252_p11 = scmp.ne.s32.totalorder %s29_s27, %s251_s8  ;;  %p257_p13 = scmp.lt.s32.totalorder %s251_s8, %s251_s8 }
  0x1d   :  { %p258_p0 = por %p257_p13, %p256_p12 }
  0x1f   :  { %p259_p1 = pnand %p258_p0, %p252_p11 }
  0x21   :  { %262 = shalt.err (!%p259_p1)
}
  0x22   :  { %34 = dma.hbm_to_vmem [thread:$0]  %s365_s1, 512, %s29_s27, [#allocation6], %s292_s22, %s292_s22, %s293_s23  }
  0x23   :  { %285 = dma.done.wait [#allocation3], 256  }
  0x24   :  { %286 = vsyncadd [#allocation3], 4294967040 }
  0x25   :  { %287 = dma.done.wait [#allocation6], 512  }
  0x26   :  { %288 = vsyncadd [#allocation6], 4294966784  ;;  %vm56_vm0 = vcmask 261120   ;;  %v45_v0 = vld [vmem:[#allocation5] sm:$0xff]  ;;  %v46_v1 = vld [vmem:[#allocation5 + $0x8] sm:$0xff] }
  0x27   :  { %v47_v2 = vld [vmem:[#allocation5 + $0x10] sm:$0xff]  ;;  %v198_v3 = vpack.c.bf16 %v46_v1, %v45_v0  ;;  %v48_v4 = vld [vmem:[#allocation5 + $0x18] sm:$0xff] }
  0x28   :  { %v43_v5 = vld [vmem:[#allocation2] sm:$0xff]  ;;  %v202_v6 = vpack.c.bf16 %v48_v4, %v47_v2  ;;  %v44_v7 = vld [vmem:[#allocation2 + $0x8] sm:$0xff] }
  0x29   :  { %195 = vmatprep.mubr.msk.f32.mxu0 %vm56_vm0, %v43_v5  ;;  %199 = vmatprep.subr.bf16.mxu0 %v198_v3  ;;  %v178_v8 = vld [vmem:[%s366_s2] ss:$0 sm:$0xff]  ;;  %s295_s2 = smov [#allocation7]  }
  0x2a   :  { %201 = vmatpush3.bf16.msra.mxu0 %v198_v3  ;;  %s165_s11 = sshll.u32 %s295_s2, 4  ;;  %s166_s11 = int_to_ptr.vmem [resolvable:$true] %s165_s11 }
  0x2b   :  { %203 = vmatprep.subr.bf16.mxu0 %v202_v6  ;;  %s263_s12 = scalar_lea.vmem %s166_s11, 256  ;;  %p268_p3 = scmp.lt.s32.totalorder %s166_s11, %s166_s11 }
  0x2c   :  { %p264_p2 = scmp.ne.s32.totalorder %s166_s11, %s263_s12  ;;  %p269_p4 = scmp.lt.s32.totalorder %s263_s12, %s263_s12 }
  0x2e   :  { %205 = vmatpush3.bf16.msra.mxu0 %v202_v6  ;;  %p270_p5 = por %p269_p4, %p268_p3 }
  0x30   :  { %p271_p6 = pnand %p270_p5, %p264_p2 }
  0x31   :  { %196 = vmatmul.mubr.msk.f32.vlgmr.msra.gmra.mrb[0].mxu0 %vm56_vm0, %v44_v7 }
 0x104   :  { %v197_v9 = vpop.f32.mrb[0].mxu0 }
 0x105   :  { %v129_v10 = vpop.f32.mrb[1].mxu0  ;;  %v135_v12 = vadd.f32 %v197_v9, %v178_v8 }
 0x106   :  { %v130_v11 = vadd.f32 %v178_v8, %v129_v10 }
 0x108   :  { %138 = vmax.xlane.f32.xlu0 %v130_v11 }
 0x10c   :  { %140 = vmax.xlane.f32.xlu0 %v135_v12 }
 0x195   :  { %v139_v13 = vpop.xlane.xlu0 %138 }
 0x196   :  { %v142_v14 = vsub.f32 %v130_v11, %v139_v13 }
 0x198   :  { %v144_v15 = vmul.f32 1.442695, %v142_v14 }
 0x199   :  { %v141_v16 = vpop.xlane.xlu0 %140 }
 0x19a   :  { %v143_v17 = vsub.f32 %v135_v12, %v141_v16  ;;  %211 = vpow2.f32 %v144_v15 }
 0x19c   :  { %v146_v18 = vmul.f32 1.442695, %v143_v17 }
 0x19e   :  { %213 = vpow2.f32 %v146_v18 }
 0x1a4   :  { %v212_v19 = vpop.eup %211 }
 0x1a5   :  { %148 = vadd.xlane.f32.xlu1 %v212_v19 }
 0x1a8   :  { %v214_v20 = vpop.eup %213 }
 0x1a9   :  { %150 = vadd.xlane.f32.xlu1 %v214_v20 }
 0x232   :  { %v149_v21 = vpop.xlane.xlu1 %148 }
 0x233   :  { %215 = vlog2.f32 %v149_v21 }
 0x236   :  { %v151_v22 = vpop.xlane.xlu1 %150 }
 0x237   :  { %217 = vlog2.f32 %v151_v22 }
 0x23d   :  { %v216_v23 = vpop.eup %215 }
 0x23e   :  { %v153_v24 = vmul.f32 0.6931472, %v216_v23 }
 0x240   :  { %v156_v25 = vsub.f32 %v142_v14, %v153_v24 }
 0x241   :  { %v218_v26 = vpop.eup %217 }
 0x242   :  { %158 = vst [vmem:[#allocation7] sm:$0xff] %v156_v25  ;;  %v155_v27 = vmul.f32 0.6931472, %v218_v26 }
 0x244   :  { %v157_v28 = vsub.f32 %v143_v17, %v155_v27 }
 0x246   :  { %159 = vst [vmem:[#allocation7 + $0x8] sm:$0xff] %v157_v28 }
 0x247   :  { %274 = shalt.err (!%p271_p6)
}
 0x248   :  { %s275_s15 = scalar_lea.hbm %s367_s3, 256 }
 0x249   :  { %p276_p7 = scmp.ne.s32.totalorder %s367_s3, %s275_s15  ;;  %p279_p8 = scmp.lt.u32.totalorder %s275_s15, %s367_s3 }
 0x24b   :  { %p281_p9 = pnand %p279_p8, %p276_p7 }
 0x24d   :  { %284 = shalt.err (!%p281_p9)
}
 0x24e   :  { %171 = dma.vmem_to_hbm [thread:$0]  %s166_s11, 256, %s367_s3, [#allocation4], %s292_s22, %s292_s22, %s293_s23  }
 0x24f   :  { %289 = dma.done.wait [#allocation4], 256  }
 0x250   :  { %290 = vsyncadd [#allocation4], 4294967040 }
 0x251   :  { %175 = vsyncpa [#allocation3], 1 }
 0x252   :  { %176 = vsyncpa [#allocation6], 1 }
 0x253   :  { %177 = vsyncpa [#allocation4], 1 }

// kernel: tpu_custom_call.1
= control target key start
LH: loop header
LB: loop body
LE: loop exit
PB: predicated region body
PF: predicated region fallthrough
CT: control target
= control target key end

     0   :  { %8 = vsyncpa [#allocation3], 0  ;;  %s364_s0 = inlined_call_operand.hbm [shape: f32[16,32], index: 0, kind: input, shape index: {}]   ;;  %s365_s1 = inlined_call_operand.hbm [shape: f32[32,128], index: 1, kind: input, shape index: {}]   ;;  %s366_s2 = inlined_call_operand.vmem [shape: f32[1,128], index: 2, kind: input, shape index: {}]   ;;  %s367_s3 = inlined_call_operand.hbm [shape: f32[16,128], index: 3, kind: output, shape index: {}]  }
   0x1   :  { %9 = vsyncpa [#allocation6], 0 }
   0x2   :  { %10 = vsyncpa [#allocation4], 0  ;;  %s291_s12 = smov [#allocation2]   ;;  %s219_s16 = scalar_lea.hbm %s364_s0, 256 }
   0x3   :  { %s16_s13 = sshll.u32 %s291_s12, 4  ;;  %p220_p0 = scmp.ne.s32.totalorder %s364_s0, %s219_s16  ;;  %s17_s13 = int_to_ptr.vmem [resolvable:$true] %s16_s13 }
   0x4   :  { %p223_p1 = scmp.lt.u32.totalorder %s219_s16, %s364_s0 }
   0x6   :  { %p225_p2 = pnand %p223_p1, %p220_p0 }
   0x8   :  { %228 = shalt.err (!%p225_p2)
}
   0x9   :  { %s229_s21 = scalar_lea.vmem %s17_s13, 256  ;;  %p234_p4 = scmp.lt.s32.totalorder %s17_s13, %s17_s13 }
   0xa   :  { %p230_p3 = scmp.ne.s32.totalorder %s17_s13, %s229_s21  ;;  %p235_p5 = scmp.lt.s32.totalorder %s229_s21, %s229_s21 }
   0xc   :  { %p236_p6 = por %p235_p5, %p234_p4 }
   0xe   :  { %p237_p7 = pnand %p236_p6, %p230_p3 }
  0x10   :  { %240 = shalt.err (!%p237_p7)
}
  0x11   :  { %s292_s22 = smov 128   ;;  %s293_s23 = smov 8  }
  0x12   :  { %22 = dma.hbm_to_vmem [thread:$0]  %s364_s0, 256, %s17_s13, [#allocation3], %s292_s22, %s292_s22, %s293_s23  }
  0x13   :  { %s294_s26 = smov [#allocation5]   ;;  %s241_s30 = scalar_lea.hbm %s365_s1, 512 }
  0x14   :  { %s28_s27 = sshll.u32 %s294_s26, 4  ;;  %p242_p8 = scmp.ne.s32.totalorder %s365_s1, %s241_s30  ;;  %s29_s27 = int_to_ptr.vmem [resolvable:$true] %s28_s27 }
  0x15   :  { %p245_p9 = scmp.lt.u32.totalorder %s241_s30, %s365_s1 }
  0x17   :  { %p247_p10 = pnand %p245_p9, %p242_p8 }
  0x19   :  { %250 = shalt.err (!%p247_p10)
}
  0x1a   :  { %s251_s8 = scalar_lea.vmem %s29_s27, 512  ;;  %p256_p12 = scmp.lt.s32.totalorder %s29_s27, %s29_s27 }
  0x1b   :  { %p252_p11 = scmp.ne.s32.totalorder %s29_s27, %s251_s8  ;;  %p257_p13 = scmp.lt.s32.totalorder %s251_s8, %s251_s8 }
  0x1d   :  { %p258_p0 = por %p257_p13, %p256_p12 }
  0x1f   :  { %p259_p1 = pnand %p258_p0, %p252_p11 }
  0x21   :  { %262 = shalt.err (!%p259_p1)
}
  0x22   :  { %34 = dma.hbm_to_vmem [thread:$0]  %s365_s1, 512, %s29_s27, [#allocation6], %s292_s22, %s292_s22, %s293_s23  }
  0x23   :  { %285 = dma.done.wait [#allocation3], 256  }
  0x24   :  { %286 = vsyncadd [#allocation3], 4294967040 }
  0x25   :  { %287 = dma.done.wait [#allocation6], 512  }
  0x26   :  { %288 = vsyncadd [#allocation6], 4294966784  ;;  %vm56_vm0 = vcmask 261120   ;;  %v45_v0 = vld [vmem:[#allocation5] sm:$0xff]  ;;  %v46_v1 = vld [vmem:[#allocation5 + $0x8] sm:$0xff] }
  0x27   :  { %v47_v2 = vld [vmem:[#allocation5 + $0x10] sm:$0xff]  ;;  %v198_v3 = vpack.c.bf16 %v46_v1, %v45_v0  ;;  %v48_v4 = vld [vmem:[#allocation5 + $0x18] sm:$0xff] }
  0x28   :  { %v43_v5 = vld [vmem:[#allocation2] sm:$0xff]  ;;  %v202_v6 = vpack.c.bf16 %v48_v4, %v47_v2  ;;  %v44_v7 = vld [vmem:[#allocation2 + $0x8] sm:$0xff] }
  0x29   :  { %195 = vmatprep.mubr.msk.f32.mxu0 %vm56_vm0, %v43_v5  ;;  %199 = vmatprep.subr.bf16.mxu0 %v198_v3  ;;  %v178_v8 = vld [vmem:[%s366_s2] ss:$0 sm:$0xff]  ;;  %s295_s2 = smov [#allocation7]  }
  0x2a   :  { %201 = vmatpush3.bf16.msra.mxu0 %v198_v3  ;;  %s165_s11 = sshll.u32 %s295_s2, 4  ;;  %s166_s11 = int_to_ptr.vmem [resolvable:$true] %s165_s11 }
  0x2b   :  { %203 = vmatprep.subr.bf16.mxu0 %v202_v6  ;;  %s263_s12 = scalar_lea.vmem %s166_s11, 256  ;;  %p268_p3 = scmp.lt.s32.totalorder %s166_s11, %s166_s11 }
  0x2c   :  { %p264_p2 = scmp.ne.s32.totalorder %s166_s11, %s263_s12  ;;  %p269_p4 = scmp.lt.s32.totalorder %s263_s12, %s263_s12 }
  0x2e   :  { %205 = vmatpush3.bf16.msra.mxu0 %v202_v6  ;;  %p270_p5 = por %p269_p4, %p268_p3 }
  0x30   :  { %p271_p6 = pnand %p270_p5, %p264_p2 }
  0x31   :  { %196 = vmatmul.mubr.msk.f32.vlgmr.msra.gmra.mrb[0].mxu0 %vm56_vm0, %v44_v7 }
 0x104   :  { %v197_v9 = vpop.f32.mrb[0].mxu0 }
 0x105   :  { %v129_v10 = vpop.f32.mrb[1].mxu0  ;;  %v135_v12 = vadd.f32 %v197_v9, %v178_v8 }
 0x106   :  { %v130_v11 = vadd.f32 %v178_v8, %v129_v10 }
 0x108   :  { %138 = vmax.xlane.f32.xlu0 %v130_v11 }
 0x10c   :  { %140 = vmax.xlane.f32.xlu0 %v135_v12 }
 0x195   :  { %v139_v13 = vpop.xlane.xlu0 %138 }
 0x196   :  { %v142_v14 = vsub.f32 %v130_v11, %v139_v13 }
 0x198   :  { %v144_v15 = vmul.f32 1.442695, %v142_v14 }
 0x199   :  { %v141_v16 = vpop.xlane.xlu0 %140 }
 0x19a   :  { %v143_v17 = vsub.f32 %v135_v12, %v141_v16  ;;  %211 = vpow2.f32 %v144_v15 }
 0x19c   :  { %v146_v18 = vmul.f32 1.442695, %v143_v17 }
 0x19e   :  { %213 = vpow2.f32 %v146_v18 }
 0x1a4   :  { %v212_v19 = vpop.eup %211 }
 0x1a5   :  { %148 = vadd.xlane.f32.xlu1 %v212_v19 }
 0x1a8   :  { %v214_v20 = vpop.eup %213 }
 0x1a9   :  { %150 = vadd.xlane.f32.xlu1 %v214_v20 }
 0x232   :  { %v149_v21 = vpop.xlane.xlu1 %148 }
 0x233   :  { %215 = vlog2.f32 %v149_v21 }
 0x236   :  { %v151_v22 = vpop.xlane.xlu1 %150 }
 0x237   :  { %217 = vlog2.f32 %v151_v22 }
 0x23d   :  { %v216_v23 = vpop.eup %215 }
 0x23e   :  { %v153_v24 = vmul.f32 0.6931472, %v216_v23 }
 0x240   :  { %v156_v25 = vsub.f32 %v142_v14, %v153_v24 }
 0x241   :  { %v218_v26 = vpop.eup %217 }
 0x242   :  { %158 = vst [vmem:[#allocation7] sm:$0xff] %v156_v25  ;;  %v155_v27 = vmul.f32 0.6931472, %v218_v26 }
 0x244   :  { %v157_v28 = vsub.f32 %v143_v17, %v155_v27 }
 0x246   :  { %159 = vst [vmem:[#allocation7 + $0x8] sm:$0xff] %v157_v28 }
 0x247   :  { %274 = shalt.err (!%p271_p6)
}
 0x248   :  { %s275_s15 = scalar_lea.hbm %s367_s3, 256 }
 0x249   :  { %p276_p7 = scmp.ne.s32.totalorder %s367_s3, %s275_s15  ;;  %p279_p8 = scmp.lt.u32.totalorder %s275_s15, %s367_s3 }
 0x24b   :  { %p281_p9 = pnand %p279_p8, %p276_p7 }
 0x24d   :  { %284 = shalt.err (!%p281_p9)
}
 0x24e   :  { %171 = dma.vmem_to_hbm [thread:$0]  %s166_s11, 256, %s367_s3, [#allocation4], %s292_s22, %s292_s22, %s293_s23  }
 0x24f   :  { %289 = dma.done.wait [#allocation4], 256  }
 0x250   :  { %290 = vsyncadd [#allocation4], 4294967040 }
 0x251   :  { %175 = vsyncpa [#allocation3], 1 }
 0x252   :  { %176 = vsyncpa [#allocation6], 1 }
 0x253   :  { %177 = vsyncpa [#allocation4], 1 }

</bundles_post_ra>
